<compile_context>
chip_gen: v6e
topology: v6e:2x2x1
jax: 0.10.0
libtpu: 0.0.40
codegen_flags: <defaults>
</compile_context>

<pallas_src>
import functools

import jax
import jax.numpy as jnp
from jax import lax
from jax.experimental import pallas as pl
from jax.experimental.pallas import tpu as pltpu

STATE_DIM = 11
ACTION_DIM = 5
HIDDEN_DIMS = (128, 256, 128)
OUT_PAD = 128            # lane-dense padded output width; Q-values live in [:, :ACTION_DIM]
LN_EPS = 1e-5
DEFAULT_BLOCK_B = 1024   # batch tile; sweep 1024-4096 on real workloads


def _round_up(x, m):
    return ((x + m - 1) // m) * m


def _layernorm(x, gamma, beta):
    # Single pass: mean and mean-of-squares, var = E[x^2] - mu^2 (clamped >= 0).
    mu = jnp.mean(x, axis=-1, keepdims=True)
    ex2 = jnp.mean(x * x, axis=-1, keepdims=True)
    var = jnp.maximum(ex2 - mu * mu, 0.0)
    return (x - mu) * lax.rsqrt(var + LN_EPS) * gamma + beta


def dqn_kernel(
    x_ref,
    g0_ref, b0_ref,                        # input LayerNorm(11)
    w1_ref, bias1_ref, g1_ref, be1_ref,    # Linear(11->128)  + LN(128)
    w2_ref, bias2_ref, g2_ref, be2_ref,    # Linear(128->256) + LN(256)
    w3_ref, bias3_ref, g3_ref, be3_ref,    # Linear(256->128) + LN(128)
    w4_ref, bias4_ref,                     # Linear(128->5), padded to 128 cols
    out_ref,
):
    x = x_ref[...].astype(jnp.float32)

    # input_norm
    h = _layernorm(x, g0_ref[...], b0_ref[...])

    # block 1: Linear -> ReLU -> LayerNorm (Dropout = identity at inference)
    h = jnp.dot(h.astype(jnp.bfloat16), w1_ref[...],
                preferred_element_type=jnp.float32) + bias1_ref[...]
    h = jnp.maximum(h, 0.0)
    h = _layernorm(h, g1_ref[...], be1_ref[...])

    # block 2
    h = jnp.dot(h.astype(jnp.bfloat16), w2_ref[...],
                preferred_element_type=jnp.float32) + bias2_ref[...]
    h = jnp.maximum(h, 0.0)
    h = _layernorm(h, g2_ref[...], be2_ref[...])

    # block 3
    h = jnp.dot(h.astype(jnp.bfloat16), w3_ref[...],
                preferred_element_type=jnp.float32) + bias3_ref[...]
    h = jnp.maximum(h, 0.0)
    h = _layernorm(h, g3_ref[...], be3_ref[...])

    # output head (lane-dense padded to 128 columns; caller slices [:, :5])
    q = jnp.dot(h.astype(jnp.bfloat16), w4_ref[...],
                preferred_element_type=jnp.float32) + bias4_ref[...]
    out_ref[...] = q.astype(out_ref.dtype)


@functools.partial(jax.jit, static_argnames=("block_b",))
def dqn_forward(x, params, block_b=DEFAULT_BLOCK_B):
    """x: [B, STATE_DIM] float32 -> Q-values [B, ACTION_DIM] float32."""
    batch = x.shape[0]
    tb = min(block_b, _round_up(batch, 8))     # batch tile (multiple of 8 sublanes)
    b_pad = _round_up(batch, tb)
    if b_pad != batch:
        x = jnp.pad(x, ((0, b_pad - batch), (0, 0)))
    grid = (b_pad // tb,)

    const_map = lambda i: (0, 0)               # weights/LN params: resident, no re-DMA
    in_specs = [pl.BlockSpec((tb, STATE_DIM), lambda i: (i, 0))]
    in_specs += [pl.BlockSpec(p.shape, const_map) for p in params]
    out_specs = pl.BlockSpec((tb, OUT_PAD), lambda i: (i, 0))

    q_pad = pl.pallas_call(
        dqn_kernel,
        out_shape=jax.ShapeDtypeStruct((b_pad, OUT_PAD), jnp.float32),
        grid=grid,
        in_specs=in_specs,
        out_specs=out_specs,
        compiler_params=pltpu.CompilerParams(
            dimension_semantics=("parallel",),          # megacore sharding on v7x
            vmem_limit_bytes=48 * 1024 * 1024,          # fits v7x 64 MiB, lifts v5e 16 MiB default
        ),
    )(x, *params)
    return q_pad[:batch, :ACTION_DIM]


def _xavier_uniform(key, fan_in, fan_out):
    # Matches torch.nn.init.xavier_uniform_ on a (fan_out, fan_in) weight,
    # materialized directly as its transpose [fan_in, fan_out].
    bound = (6.0 / (fan_in + fan_out)) ** 0.5
    return jax.random.uniform(
        key, (fan_in, fan_out), dtype=jnp.float32, minval=-bound, maxval=bound
    )


def init_params(key):
    dims = (STATE_DIM,) + HIDDEN_DIMS + (ACTION_DIM,)
    keys = jax.random.split(key, len(dims) - 1)

    params = []
    # input LayerNorm(state_dim): gamma=1, beta=0
    params += [jnp.ones((1, STATE_DIM), jnp.float32),
               jnp.zeros((1, STATE_DIM), jnp.float32)]

    # three hidden blocks: Linear (bf16 weights) + LayerNorm (f32)
    for i, hidden in enumerate(HIDDEN_DIMS):
        w = _xavier_uniform(keys[i], dims[i], hidden).astype(jnp.bfloat16)
        b = jnp.zeros((1, hidden), jnp.float32)
        gamma = jnp.ones((1, hidden), jnp.float32)
        beta = jnp.zeros((1, hidden), jnp.float32)
        params += [w, b, gamma, beta]

    # output head, zero-padded from ACTION_DIM to OUT_PAD columns (lane-dense store)
    w_out = _xavier_uniform(keys[-1], HIDDEN_DIMS[-1], ACTION_DIM)
    w_out = jnp.pad(w_out, ((0, 0), (0, OUT_PAD - ACTION_DIM))).astype(jnp.bfloat16)
    b_out = jnp.zeros((1, OUT_PAD), jnp.float32)
    params += [w_out, b_out]
    return tuple(params)


def _reference_forward(x, params):
    """Pure-JAX reference (mirrors the kernel's bf16-operand / f32-accumulate matmuls)."""
    (g0, b0,
     w1, bias1, g1, be1,
     w2, bias2, g2, be2,
     w3, bias3, g3, be3,
     w4, bias4) = params

    def ln(h, g, b):
        mu = jnp.mean(h, axis=-1, keepdims=True)
        ex2 = jnp.mean(h * h, axis=-1, keepdims=True)
        var = jnp.maximum(ex2 - mu * mu, 0.0)
        return (h - mu) / jnp.sqrt(var + LN_EPS) * g + b

    def mm(h, w):
        return jnp.dot(h.astype(jnp.bfloat16), w, preferred_element_type=jnp.float32)

    h = ln(x, g0, b0)
    h = ln(jnp.maximum(mm(h, w1) + bias1, 0.0), g1, be1)
    h = ln(jnp.maximum(mm(h, w2) + bias2, 0.0), g2, be2)
    h = ln(jnp.maximum(mm(h, w3) + bias3, 0.0), g3, be3)
    return (mm(h, w4) + bias4)[:, :ACTION_DIM]


if __name__ == "__main__":
    key = jax.random.PRNGKey(0)
    k_params, k_x1, k_x2 = jax.random.split(key, 3)

    params = init_params(k_params)

    # Small deterministic example (single grid step).
    batch = 8
    x = jax.random.normal(k_x1, (batch, STATE_DIM), dtype=jnp.float32)
    q = jax.block_until_ready(dqn_forward(x, params))
    q_ref = _reference_forward(x, params)
    assert q.shape == (batch, ACTION_DIM)
    assert jnp.allclose(q, q_ref, atol=1e-2, rtol=1e-2), "mismatch vs reference (small)"

    # Moderate batch to exercise the multi-step, pipelined batch grid.
    batch2 = 2048
    x2 = jax.random.normal(k_x2, (batch2, STATE_DIM), dtype=jnp.float32)
    q2 = jax.block_until_ready(dqn_forward(x2, params))
    q2_ref = _reference_forward(x2, params)
    assert q2.shape == (batch2, ACTION_DIM)
    assert jnp.allclose(q2, q2_ref, atol=1e-2, rtol=1e-2), "mismatch vs reference (grid)"

    print("KERNEL_OK")
</pallas_src>

<mosaic_0001>
module attributes {stable_mosaic.version = 11 : i64} {
  func.func @dqn_kernel(%arg0: i32, %arg1: memref<8x11xf32, #tpu.memory_space<vmem>>, %arg2: memref<1x11xf32, #tpu.memory_space<vmem>>, %arg3: memref<1x11xf32, #tpu.memory_space<vmem>>, %arg4: memref<11x128xbf16, #tpu.memory_space<vmem>>, %arg5: memref<1x128xf32, #tpu.memory_space<vmem>>, %arg6: memref<1x128xf32, #tpu.memory_space<vmem>>, %arg7: memref<1x128xf32, #tpu.memory_space<vmem>>, %arg8: memref<128x256xbf16, #tpu.memory_space<vmem>>, %arg9: memref<1x256xf32, #tpu.memory_space<vmem>>, %arg10: memref<1x256xf32, #tpu.memory_space<vmem>>, %arg11: memref<1x256xf32, #tpu.memory_space<vmem>>, %arg12: memref<256x128xbf16, #tpu.memory_space<vmem>>, %arg13: memref<1x128xf32, #tpu.memory_space<vmem>>, %arg14: memref<1x128xf32, #tpu.memory_space<vmem>>, %arg15: memref<1x128xf32, #tpu.memory_space<vmem>>, %arg16: memref<128x128xbf16, #tpu.memory_space<vmem>>, %arg17: memref<1x128xf32, #tpu.memory_space<vmem>>, %arg18: memref<8x128xf32, #tpu.memory_space<vmem>>) attributes {dimension_semantics = [#tpu.dimension_semantics<parallel>], iteration_bounds = array<i64: 1>, scalar_prefetch = 0 : i64, scratch_operands = 0 : i64, tpu.core_type = #tpu.core_type<tc>, window_params = [{transform_indices = @transform_0, window_bounds = array<i64: 8, 11>}, {pipeline_mode = #tpu.pipeline_mode<synchronous>, transform_indices = @transform_1, window_bounds = array<i64: 1, 11>}, {pipeline_mode = #tpu.pipeline_mode<synchronous>, transform_indices = @transform_2, window_bounds = array<i64: 1, 11>}, {pipeline_mode = #tpu.pipeline_mode<synchronous>, transform_indices = @transform_3, window_bounds = array<i64: 11, 128>}, {pipeline_mode = #tpu.pipeline_mode<synchronous>, transform_indices = @transform_4, window_bounds = array<i64: 1, 128>}, {pipeline_mode = #tpu.pipeline_mode<synchronous>, transform_indices = @transform_5, window_bounds = array<i64: 1, 128>}, {pipeline_mode = #tpu.pipeline_mode<synchronous>, transform_indices = @transform_6, window_bounds = array<i64: 1, 128>}, {pipeline_mode = #tpu.pipeline_mode<synchronous>, transform_indices = @transform_7, window_bounds = array<i64: 128, 256>}, {pipeline_mode = #tpu.pipeline_mode<synchronous>, transform_indices = @transform_8, window_bounds = array<i64: 1, 256>}, {pipeline_mode = #tpu.pipeline_mode<synchronous>, transform_indices = @transform_9, window_bounds = array<i64: 1, 256>}, {pipeline_mode = #tpu.pipeline_mode<synchronous>, transform_indices = @transform_10, window_bounds = array<i64: 1, 256>}, {pipeline_mode = #tpu.pipeline_mode<synchronous>, transform_indices = @transform_11, window_bounds = array<i64: 256, 128>}, {pipeline_mode = #tpu.pipeline_mode<synchronous>, transform_indices = @transform_12, window_bounds = array<i64: 1, 128>}, {pipeline_mode = #tpu.pipeline_mode<synchronous>, transform_indices = @transform_13, window_bounds = array<i64: 1, 128>}, {pipeline_mode = #tpu.pipeline_mode<synchronous>, transform_indices = @transform_14, window_bounds = array<i64: 1, 128>}, {pipeline_mode = #tpu.pipeline_mode<synchronous>, transform_indices = @transform_15, window_bounds = array<i64: 128, 128>}, {pipeline_mode = #tpu.pipeline_mode<synchronous>, transform_indices = @transform_16, window_bounds = array<i64: 1, 128>}, {transform_indices = @transform_17, window_bounds = array<i64: 8, 128>}]} {
    %c0 = arith.constant 0 : index
    %c0_0 = arith.constant 0 : index
    %0 = vector.load %arg1[%c0, %c0_0] : memref<8x11xf32, #tpu.memory_space<vmem>>, vector<8x11xf32>
    %c0_1 = arith.constant 0 : index
    %c0_2 = arith.constant 0 : index
    %1 = vector.load %arg2[%c0_1, %c0_2] : memref<1x11xf32, #tpu.memory_space<vmem>>, vector<1x11xf32>
    %c0_3 = arith.constant 0 : index
    %c0_4 = arith.constant 0 : index
    %2 = vector.load %arg3[%c0_3, %c0_4] : memref<1x11xf32, #tpu.memory_space<vmem>>, vector<1x11xf32>
    %cst = arith.constant dense<0.000000e+00> : vector<8xf32>
    %3 = vector.multi_reduction <add>, %0, %cst [1] : vector<8x11xf32> to vector<8xf32>
    %4 = vector.shape_cast %3 : vector<8xf32> to vector<8x1xf32>
    %cst_5 = arith.constant 1.100000e+01 : f32
    %5 = vector.broadcast %cst_5 : f32 to vector<8x1xf32>
    %6 = arith.divf %4, %5 : vector<8x1xf32>
    %7 = arith.mulf %0, %0 : vector<8x11xf32>
    %cst_6 = arith.constant dense<0.000000e+00> : vector<8xf32>
    %8 = vector.multi_reduction <add>, %7, %cst_6 [1] : vector<8x11xf32> to vector<8xf32>
    %9 = vector.shape_cast %8 : vector<8xf32> to vector<8x1xf32>
    %cst_7 = arith.constant 1.100000e+01 : f32
    %10 = vector.broadcast %cst_7 : f32 to vector<8x1xf32>
    %11 = arith.divf %9, %10 : vector<8x1xf32>
    %12 = arith.mulf %6, %6 : vector<8x1xf32>
    %13 = arith.subf %11, %12 : vector<8x1xf32>
    %cst_8 = arith.constant 0.000000e+00 : f32
    %14 = vector.broadcast %cst_8 : f32 to vector<8x1xf32>
    %15 = arith.maximumf %13, %14 : vector<8x1xf32>
    %16 = vector.broadcast %6 : vector<8x1xf32> to vector<8x11xf32>
    %17 = arith.subf %0, %16 : vector<8x11xf32>
    %cst_9 = arith.constant 9.99999974E-6 : f32
    %18 = vector.broadcast %cst_9 : f32 to vector<8x1xf32>
    %19 = arith.addf %15, %18 : vector<8x1xf32>
    %20 = math.rsqrt %19 : vector<8x1xf32>
    %21 = vector.broadcast %20 : vector<8x1xf32> to vector<8x11xf32>
    %22 = arith.mulf %17, %21 : vector<8x11xf32>
    %23 = vector.broadcast %1 : vector<1x11xf32> to vector<8x11xf32>
    %24 = arith.mulf %22, %23 : vector<8x11xf32>
    %25 = vector.broadcast %2 : vector<1x11xf32> to vector<8x11xf32>
    %26 = arith.addf %24, %25 : vector<8x11xf32>
    %27 = arith.truncf %26 : vector<8x11xf32> to vector<8x11xbf16>
    %c0_10 = arith.constant 0 : index
    %c0_11 = arith.constant 0 : index
    %28 = vector.load %arg4[%c0_10, %c0_11] : memref<11x128xbf16, #tpu.memory_space<vmem>>, vector<11x128xbf16>
    %cst_12 = arith.constant dense<0.000000e+00> : vector<8x128xf32>
    %29 = tpu.matmul %27, %28, %cst_12 {dimension_numbers = #tpu.dot_dimension_numbers<[1], [0], [0], [1], [0, 0, 1, 1], [], []>} : vector<8x11xbf16>, vector<11x128xbf16>, vector<8x128xf32> -> vector<8x128xf32>
    %c0_13 = arith.constant 0 : index
    %c0_14 = arith.constant 0 : index
    %30 = vector.load %arg5[%c0_13, %c0_14] : memref<1x128xf32, #tpu.memory_space<vmem>>, vector<1x128xf32>
    %31 = vector.broadcast %30 : vector<1x128xf32> to vector<8x128xf32>
    %32 = arith.addf %29, %31 : vector<8x128xf32>
    %cst_15 = arith.constant 0.000000e+00 : f32
    %33 = vector.broadcast %cst_15 : f32 to vector<8x128xf32>
    %34 = arith.maximumf %32, %33 : vector<8x128xf32>
    %c0_16 = arith.constant 0 : index
    %c0_17 = arith.constant 0 : index
    %35 = vector.load %arg6[%c0_16, %c0_17] : memref<1x128xf32, #tpu.memory_space<vmem>>, vector<1x128xf32>
    %c0_18 = arith.constant 0 : index
    %c0_19 = arith.constant 0 : index
    %36 = vector.load %arg7[%c0_18, %c0_19] : memref<1x128xf32, #tpu.memory_space<vmem>>, vector<1x128xf32>
    %cst_20 = arith.constant dense<0.000000e+00> : vector<8xf32>
    %37 = vector.multi_reduction <add>, %34, %cst_20 [1] : vector<8x128xf32> to vector<8xf32>
    %38 = vector.shape_cast %37 : vector<8xf32> to vector<8x1xf32>
    %cst_21 = arith.constant 1.280000e+02 : f32
    %39 = vector.broadcast %cst_21 : f32 to vector<8x1xf32>
    %40 = arith.divf %38, %39 : vector<8x1xf32>
    %41 = arith.mulf %34, %34 : vector<8x128xf32>
    %cst_22 = arith.constant dense<0.000000e+00> : vector<8xf32>
    %42 = vector.multi_reduction <add>, %41, %cst_22 [1] : vector<8x128xf32> to vector<8xf32>
    %43 = vector.shape_cast %42 : vector<8xf32> to vector<8x1xf32>
    %cst_23 = arith.constant 1.280000e+02 : f32
    %44 = vector.broadcast %cst_23 : f32 to vector<8x1xf32>
    %45 = arith.divf %43, %44 : vector<8x1xf32>
    %46 = arith.mulf %40, %40 : vector<8x1xf32>
    %47 = arith.subf %45, %46 : vector<8x1xf32>
    %cst_24 = arith.constant 0.000000e+00 : f32
    %48 = vector.broadcast %cst_24 : f32 to vector<8x1xf32>
    %49 = arith.maximumf %47, %48 : vector<8x1xf32>
    %50 = vector.broadcast %40 : vector<8x1xf32> to vector<8x128xf32>
    %51 = arith.subf %34, %50 : vector<8x128xf32>
    %cst_25 = arith.constant 9.99999974E-6 : f32
    %52 = vector.broadcast %cst_25 : f32 to vector<8x1xf32>
    %53 = arith.addf %49, %52 : vector<8x1xf32>
    %54 = math.rsqrt %53 : vector<8x1xf32>
    %55 = vector.broadcast %54 : vector<8x1xf32> to vector<8x128xf32>
    %56 = arith.mulf %51, %55 : vector<8x128xf32>
    %57 = vector.broadcast %35 : vector<1x128xf32> to vector<8x128xf32>
    %58 = arith.mulf %56, %57 : vector<8x128xf32>
    %59 = vector.broadcast %36 : vector<1x128xf32> to vector<8x128xf32>
    %60 = arith.addf %58, %59 : vector<8x128xf32>
    %61 = arith.truncf %60 : vector<8x128xf32> to vector<8x128xbf16>
    %c0_26 = arith.constant 0 : index
    %c0_27 = arith.constant 0 : index
    %62 = vector.load %arg8[%c0_26, %c0_27] : memref<128x256xbf16, #tpu.memory_space<vmem>>, vector<128x256xbf16>
    %cst_28 = arith.constant dense<0.000000e+00> : vector<8x256xf32>
    %63 = tpu.matmul %61, %62, %cst_28 {dimension_numbers = #tpu.dot_dimension_numbers<[1], [0], [0], [1], [0, 0, 1, 1], [], []>} : vector<8x128xbf16>, vector<128x256xbf16>, vector<8x256xf32> -> vector<8x256xf32>
    %c0_29 = arith.constant 0 : index
    %c0_30 = arith.constant 0 : index
    %64 = vector.load %arg9[%c0_29, %c0_30] : memref<1x256xf32, #tpu.memory_space<vmem>>, vector<1x256xf32>
    %65 = vector.broadcast %64 : vector<1x256xf32> to vector<8x256xf32>
    %66 = arith.addf %63, %65 : vector<8x256xf32>
    %cst_31 = arith.constant 0.000000e+00 : f32
    %67 = vector.broadcast %cst_31 : f32 to vector<8x256xf32>
    %68 = arith.maximumf %66, %67 : vector<8x256xf32>
    %c0_32 = arith.constant 0 : index
    %c0_33 = arith.constant 0 : index
    %69 = vector.load %arg10[%c0_32, %c0_33] : memref<1x256xf32, #tpu.memory_space<vmem>>, vector<1x256xf32>
    %c0_34 = arith.constant 0 : index
    %c0_35 = arith.constant 0 : index
    %70 = vector.load %arg11[%c0_34, %c0_35] : memref<1x256xf32, #tpu.memory_space<vmem>>, vector<1x256xf32>
    %cst_36 = arith.constant dense<0.000000e+00> : vector<8xf32>
    %71 = vector.multi_reduction <add>, %68, %cst_36 [1] : vector<8x256xf32> to vector<8xf32>
    %72 = vector.shape_cast %71 : vector<8xf32> to vector<8x1xf32>
    %cst_37 = arith.constant 2.560000e+02 : f32
    %73 = vector.broadcast %cst_37 : f32 to vector<8x1xf32>
    %74 = arith.divf %72, %73 : vector<8x1xf32>
    %75 = arith.mulf %68, %68 : vector<8x256xf32>
    %cst_38 = arith.constant dense<0.000000e+00> : vector<8xf32>
    %76 = vector.multi_reduction <add>, %75, %cst_38 [1] : vector<8x256xf32> to vector<8xf32>
    %77 = vector.shape_cast %76 : vector<8xf32> to vector<8x1xf32>
    %cst_39 = arith.constant 2.560000e+02 : f32
    %78 = vector.broadcast %cst_39 : f32 to vector<8x1xf32>
    %79 = arith.divf %77, %78 : vector<8x1xf32>
    %80 = arith.mulf %74, %74 : vector<8x1xf32>
    %81 = arith.subf %79, %80 : vector<8x1xf32>
    %cst_40 = arith.constant 0.000000e+00 : f32
    %82 = vector.broadcast %cst_40 : f32 to vector<8x1xf32>
    %83 = arith.maximumf %81, %82 : vector<8x1xf32>
    %84 = vector.broadcast %74 : vector<8x1xf32> to vector<8x256xf32>
    %85 = arith.subf %68, %84 : vector<8x256xf32>
    %cst_41 = arith.constant 9.99999974E-6 : f32
    %86 = vector.broadcast %cst_41 : f32 to vector<8x1xf32>
    %87 = arith.addf %83, %86 : vector<8x1xf32>
    %88 = math.rsqrt %87 : vector<8x1xf32>
    %89 = vector.broadcast %88 : vector<8x1xf32> to vector<8x256xf32>
    %90 = arith.mulf %85, %89 : vector<8x256xf32>
    %91 = vector.broadcast %69 : vector<1x256xf32> to vector<8x256xf32>
    %92 = arith.mulf %90, %91 : vector<8x256xf32>
    %93 = vector.broadcast %70 : vector<1x256xf32> to vector<8x256xf32>
    %94 = arith.addf %92, %93 : vector<8x256xf32>
    %95 = arith.truncf %94 : vector<8x256xf32> to vector<8x256xbf16>
    %c0_42 = arith.constant 0 : index
    %c0_43 = arith.constant 0 : index
    %96 = vector.load %arg12[%c0_42, %c0_43] : memref<256x128xbf16, #tpu.memory_space<vmem>>, vector<256x128xbf16>
    %cst_44 = arith.constant dense<0.000000e+00> : vector<8x128xf32>
    %97 = tpu.matmul %95, %96, %cst_44 {dimension_numbers = #tpu.dot_dimension_numbers<[1], [0], [0], [1], [0, 0, 1, 1], [], []>} : vector<8x256xbf16>, vector<256x128xbf16>, vector<8x128xf32> -> vector<8x128xf32>
    %c0_45 = arith.constant 0 : index
    %c0_46 = arith.constant 0 : index
    %98 = vector.load %arg13[%c0_45, %c0_46] : memref<1x128xf32, #tpu.memory_space<vmem>>, vector<1x128xf32>
    %99 = vector.broadcast %98 : vector<1x128xf32> to vector<8x128xf32>
    %100 = arith.addf %97, %99 : vector<8x128xf32>
    %cst_47 = arith.constant 0.000000e+00 : f32
    %101 = vector.broadcast %cst_47 : f32 to vector<8x128xf32>
    %102 = arith.maximumf %100, %101 : vector<8x128xf32>
    %c0_48 = arith.constant 0 : index
    %c0_49 = arith.constant 0 : index
    %103 = vector.load %arg14[%c0_48, %c0_49] : memref<1x128xf32, #tpu.memory_space<vmem>>, vector<1x128xf32>
    %c0_50 = arith.constant 0 : index
    %c0_51 = arith.constant 0 : index
    %104 = vector.load %arg15[%c0_50, %c0_51] : memref<1x128xf32, #tpu.memory_space<vmem>>, vector<1x128xf32>
    %cst_52 = arith.constant dense<0.000000e+00> : vector<8xf32>
    %105 = vector.multi_reduction <add>, %102, %cst_52 [1] : vector<8x128xf32> to vector<8xf32>
    %106 = vector.shape_cast %105 : vector<8xf32> to vector<8x1xf32>
    %cst_53 = arith.constant 1.280000e+02 : f32
    %107 = vector.broadcast %cst_53 : f32 to vector<8x1xf32>
    %108 = arith.divf %106, %107 : vector<8x1xf32>
    %109 = arith.mulf %102, %102 : vector<8x128xf32>
    %cst_54 = arith.constant dense<0.000000e+00> : vector<8xf32>
    %110 = vector.multi_reduction <add>, %109, %cst_54 [1] : vector<8x128xf32> to vector<8xf32>
    %111 = vector.shape_cast %110 : vector<8xf32> to vector<8x1xf32>
    %cst_55 = arith.constant 1.280000e+02 : f32
    %112 = vector.broadcast %cst_55 : f32 to vector<8x1xf32>
    %113 = arith.divf %111, %112 : vector<8x1xf32>
    %114 = arith.mulf %108, %108 : vector<8x1xf32>
    %115 = arith.subf %113, %114 : vector<8x1xf32>
    %cst_56 = arith.constant 0.000000e+00 : f32
    %116 = vector.broadcast %cst_56 : f32 to vector<8x1xf32>
    %117 = arith.maximumf %115, %116 : vector<8x1xf32>
    %118 = vector.broadcast %108 : vector<8x1xf32> to vector<8x128xf32>
    %119 = arith.subf %102, %118 : vector<8x128xf32>
    %cst_57 = arith.constant 9.99999974E-6 : f32
    %120 = vector.broadcast %cst_57 : f32 to vector<8x1xf32>
    %121 = arith.addf %117, %120 : vector<8x1xf32>
    %122 = math.rsqrt %121 : vector<8x1xf32>
    %123 = vector.broadcast %122 : vector<8x1xf32> to vector<8x128xf32>
    %124 = arith.mulf %119, %123 : vector<8x128xf32>
    %125 = vector.broadcast %103 : vector<1x128xf32> to vector<8x128xf32>
    %126 = arith.mulf %124, %125 : vector<8x128xf32>
    %127 = vector.broadcast %104 : vector<1x128xf32> to vector<8x128xf32>
    %128 = arith.addf %126, %127 : vector<8x128xf32>
    %129 = arith.truncf %128 : vector<8x128xf32> to vector<8x128xbf16>
    %c0_58 = arith.constant 0 : index
    %c0_59 = arith.constant 0 : index
    %130 = vector.load %arg16[%c0_58, %c0_59] : memref<128x128xbf16, #tpu.memory_space<vmem>>, vector<128x128xbf16>
    %cst_60 = arith.constant dense<0.000000e+00> : vector<8x128xf32>
    %131 = tpu.matmul %129, %130, %cst_60 {dimension_numbers = #tpu.dot_dimension_numbers<[1], [0], [0], [1], [0, 0, 1, 1], [], []>} : vector<8x128xbf16>, vector<128x128xbf16>, vector<8x128xf32> -> vector<8x128xf32>
    %c0_61 = arith.constant 0 : index
    %c0_62 = arith.constant 0 : index
    %132 = vector.load %arg17[%c0_61, %c0_62] : memref<1x128xf32, #tpu.memory_space<vmem>>, vector<1x128xf32>
    %133 = vector.broadcast %132 : vector<1x128xf32> to vector<8x128xf32>
    %134 = arith.addf %131, %133 : vector<8x128xf32>
    %c0_63 = arith.constant 0 : index
    %c0_64 = arith.constant 0 : index
    %135 = vector.load %arg18[%c0_63, %c0_64] : memref<8x128xf32, #tpu.memory_space<vmem>>, vector<8x128xf32>
    tpu.vector_store %arg18[%c0_63, %c0_64], %134 {strides = array<i32>} : memref<8x128xf32, #tpu.memory_space<vmem>>, vector<8x128xf32>,
    return
  }
  func.func @transform_0(%arg0: i32) -> (i32, i32) {
    %c0_i32 = arith.constant 0 : i32
    %c0_i32_0 = arith.constant 0 : i32
    return %arg0, %c0_i32 : i32, i32
  }
  func.func @transform_1(%arg0: i32) -> (i32, i32) {
    %c0_i32 = arith.constant 0 : i32
    %c0_i32_0 = arith.constant 0 : i32
    %c0_i32_1 = arith.constant 0 : i32
    return %c0_i32, %c0_i32_0 : i32, i32
  }
  func.func @transform_2(%arg0: i32) -> (i32, i32) {
    %c0_i32 = arith.constant 0 : i32
    %c0_i32_0 = arith.constant 0 : i32
    %c0_i32_1 = arith.constant 0 : i32
    return %c0_i32, %c0_i32_0 : i32, i32
  }
  func.func @transform_3(%arg0: i32) -> (i32, i32) {
    %c0_i32 = arith.constant 0 : i32
    %c0_i32_0 = arith.constant 0 : i32
    %c0_i32_1 = arith.constant 0 : i32
    return %c0_i32, %c0_i32_0 : i32, i32
  }
  func.func @transform_4(%arg0: i32) -> (i32, i32) {
    %c0_i32 = arith.constant 0 : i32
    %c0_i32_0 = arith.constant 0 : i32
    %c0_i32_1 = arith.constant 0 : i32
    return %c0_i32, %c0_i32_0 : i32, i32
  }
  func.func @transform_5(%arg0: i32) -> (i32, i32) {
    %c0_i32 = arith.constant 0 : i32
    %c0_i32_0 = arith.constant 0 : i32
    %c0_i32_1 = arith.constant 0 : i32
    return %c0_i32, %c0_i32_0 : i32, i32
  }
  func.func @transform_6(%arg0: i32) -> (i32, i32) {
    %c0_i32 = arith.constant 0 : i32
    %c0_i32_0 = arith.constant 0 : i32
    %c0_i32_1 = arith.constant 0 : i32
    return %c0_i32, %c0_i32_0 : i32, i32
  }
  func.func @transform_7(%arg0: i32) -> (i32, i32) {
    %c0_i32 = arith.constant 0 : i32
    %c0_i32_0 = arith.constant 0 : i32
    %c0_i32_1 = arith.constant 0 : i32
    return %c0_i32, %c0_i32_0 : i32, i32
  }
  func.func @transform_8(%arg0: i32) -> (i32, i32) {
    %c0_i32 = arith.constant 0 : i32
    %c0_i32_0 = arith.constant 0 : i32
    %c0_i32_1 = arith.constant 0 : i32
    return %c0_i32, %c0_i32_0 : i32, i32
  }
  func.func @transform_9(%arg0: i32) -> (i32, i32) {
    %c0_i32 = arith.constant 0 : i32
    %c0_i32_0 = arith.constant 0 : i32
    %c0_i32_1 = arith.constant 0 : i32
    return %c0_i32, %c0_i32_0 : i32, i32
  }
  func.func @transform_10(%arg0: i32) -> (i32, i32) {
    %c0_i32 = arith.constant 0 : i32
    %c0_i32_0 = arith.constant 0 : i32
    %c0_i32_1 = arith.constant 0 : i32
    return %c0_i32, %c0_i32_0 : i32, i32
  }
  func.func @transform_11(%arg0: i32) -> (i32, i32) {
    %c0_i32 = arith.constant 0 : i32
    %c0_i32_0 = arith.constant 0 : i32
    %c0_i32_1 = arith.constant 0 : i32
    return %c0_i32, %c0_i32_0 : i32, i32
  }
  func.func @transform_12(%arg0: i32) -> (i32, i32) {
    %c0_i32 = arith.constant 0 : i32
    %c0_i32_0 = arith.constant 0 : i32
    %c0_i32_1 = arith.constant 0 : i32
    return %c0_i32, %c0_i32_0 : i32, i32
  }
  func.func @transform_13(%arg0: i32) -> (i32, i32) {
    %c0_i32 = arith.constant 0 : i32
    %c0_i32_0 = arith.constant 0 : i32
    %c0_i32_1 = arith.constant 0 : i32
    return %c0_i32, %c0_i32_0 : i32, i32
  }
  func.func @transform_14(%arg0: i32) -> (i32, i32) {
    %c0_i32 = arith.constant 0 : i32
    %c0_i32_0 = arith.constant 0 : i32
    %c0_i32_1 = arith.constant 0 : i32
    return %c0_i32, %c0_i32_0 : i32, i32
  }
  func.func @transform_15(%arg0: i32) -> (i32, i32) {
    %c0_i32 = arith.constant 0 : i32
    %c0_i32_0 = arith.constant 0 : i32
    %c0_i32_1 = arith.constant 0 : i32
    return %c0_i32, %c0_i32_0 : i32, i32
  }
  func.func @transform_16(%arg0: i32) -> (i32, i32) {
    %c0_i32 = arith.constant 0 : i32
    %c0_i32_0 = arith.constant 0 : i32
    %c0_i32_1 = arith.constant 0 : i32
    return %c0_i32, %c0_i32_0 : i32, i32
  }
  func.func @transform_17(%arg0: i32) -> (i32, i32) {
    %c0_i32 = arith.constant 0 : i32
    %c0_i32_0 = arith.constant 0 : i32
    return %arg0, %c0_i32 : i32, i32
  }
}

</mosaic_0001>

<bundles_post_ra>
// kernel: dqn_forward.1
= control target key start
LH: loop header
LB: loop body
LE: loop exit
PB: predicated region body
PF: predicated region fallthrough
CT: control target
= control target key end

     0   :  { %s1372_s0 = inlined_call_operand.hbm [shape: f32[8,11], index: 0, kind: input, shape index: {}]   ;;  %s1373_s1 = inlined_call_operand.vmem [shape: f32[1,11], index: 1, kind: input, shape index: {}]   ;;  %s1374_s2 = inlined_call_operand.hbm [shape: f32[1,11], index: 2, kind: input, shape index: {}]   ;;  %s1375_s3 = inlined_call_operand.hbm [shape: bf16[11,128], index: 3, kind: input, shape index: {}]   ;;  %s1376_s4 = inlined_call_operand.hbm [shape: f32[1,128], index: 4, kind: input, shape index: {}]   ;;  %s1377_s5 = inlined_call_operand.vmem [shape: f32[1,128], index: 5, kind: input, shape index: {}]   ;;  %s1378_s6 = inlined_call_operand.vmem [shape: f32[1,128], index: 6, kind: input, shape index: {}]   ;;  %s1379_s7 = inlined_call_operand.hbm [shape: bf16[128,256], index: 7, kind: input, shape index: {}]   ;;  %s1380_s8 = inlined_call_operand.vmem [shape: f32[1,256], index: 8, kind: input, shape index: {}]   ;;  %s1381_s9 = inlined_call_operand.vmem [shape: f32[1,256], index: 9, kind: input, shape index: {}]   ;;  %s1382_s10 = inlined_call_operand.vmem [shape: f32[1,256], index: 10, kind: input, shape index: {}]   ;;  %s1383_s11 = inlined_call_operand.hbm [shape: bf16[256,128], index: 11, kind: input, shape index: {}]   ;;  %s1384_s12 = inlined_call_operand.vmem [shape: f32[1,128], index: 12, kind: input, shape index: {}]   ;;  %s1385_s13 = inlined_call_operand.vmem [shape: f32[1,128], index: 13, kind: input, shape index: {}]   ;;  %s1386_s14 = inlined_call_operand.vmem [shape: f32[1,128], index: 14, kind: input, shape index: {}]   ;;  %s1387_s15 = inlined_call_operand.hbm [shape: bf16[128,128], index: 15, kind: input, shape index: {}]   ;;  %s1388_s16 = inlined_call_operand.vmem [shape: f32[1,128], index: 16, kind: input, shape index: {}]   ;;  %s1389_s17 = inlined_call_operand.hbm [shape: f32[8,128], index: 17, kind: output, shape index: {}]  }
   0x1   :  { %1390 = sst [smem:[#allocation20_spill]] %s1372_s0 }
   0x2   :  { %1391 = sst [smem:[#allocation21_spill]] %s1373_s1 }
   0x3   :  { %22 = vsyncpa [#allocation3], 0 }
   0x4   :  { %23 = vsyncpa [#allocation6], 0 }
   0x5   :  { %24 = vsyncpa [#allocation9], 0 }
   0x6   :  { %25 = vsyncpa [#allocation12], 0 }
   0x7   :  { %26 = vsyncpa [#allocation4], 0  ;;  %s1171_s24 = smov [#allocation5]   ;;  %s1172_s26 = smov [#allocation8]  }
   0x8   :  { %s45_s25 = sshll.u32 %s1171_s24, 4  ;;  %s67_s27 = sshll.u32 %s1172_s26, 4  ;;  %s46_s25 = int_to_ptr.vmem [resolvable:$true] %s45_s25  ;;  %s68_s27 = int_to_ptr.vmem [resolvable:$true] %s67_s27 }
   0x9   :  { %s1009_s28 = scalar_lea.vmem %s46_s25, 16  ;;  %s1013_s29 = scalar_lea.vmem %s46_s25, 32 }
   0xa   :  { %p1010_p0 = scmp.ne.s32.totalorder %s46_s25, %s1009_s28  ;;  %p1014_p1 = scmp.lt.s32.totalorder %s46_s25, %s46_s25 }
   0xb   :  { %p1015_p2 = scmp.lt.s32.totalorder %s1013_s29, %s1009_s28 }
   0xd   :  { %p1016_p3 = por %p1015_p2, %p1014_p1 }
   0xf   :  { %p1017_p4 = pnand %p1016_p3, %p1010_p0 }
  0x11   :  { %1020 = shalt.err (!%p1017_p4)
}
  0x12   :  { %48 = dma.hbm_to_vmem [thread:$0]  %s1374_s2, 16, %s46_s25, [#allocation6]  }
  0x13   :  { %s1029_s18 = scalar_lea.vmem %s68_s27, 16  ;;  %s1033_s19 = scalar_lea.vmem %s68_s27, 32 }
  0x14   :  { %p1030_p5 = scmp.ne.s32.totalorder %s68_s27, %s1029_s18  ;;  %p1034_p6 = scmp.lt.s32.totalorder %s68_s27, %s68_s27 }
  0x15   :  { %p1035_p7 = scmp.lt.s32.totalorder %s1033_s19, %s1029_s18 }
  0x17   :  { %p1036_p8 = por %p1035_p7, %p1034_p6 }
  0x19   :  { %p1037_p9 = pnand %p1036_p8, %p1030_p5 }
  0x1b   :  { %1040 = shalt.err (!%p1037_p9)
}
  0x1c   :  { %70 = dma.hbm_to_vmem [thread:$0]  %s1376_s4, 16, %s68_s27, [#allocation9]  }
  0x1d   :  { %s1173_s21 = smov [#allocation11]   ;;  %s1174_s23 = smov [#allocation2]  }
  0x1e   :  { %s98_s22 = sshll.u32 %s1173_s21, 4  ;;  %s33_s24 = sshll.u32 %s1174_s23, 4  ;;  %s99_s22 = int_to_ptr.vmem [resolvable:$true] %s98_s22  ;;  %s34_s24 = int_to_ptr.vmem [resolvable:$true] %s33_s24 }
  0x1f   :  { %s1049_s26 = scalar_lea.vmem %s99_s22, 2048  ;;  %p1054_p11 = scmp.lt.s32.totalorder %s99_s22, %s99_s22 }
  0x20   :  { %p1050_p10 = scmp.ne.s32.totalorder %s99_s22, %s1049_s26  ;;  %p1055_p12 = scmp.lt.s32.totalorder %s1049_s26, %s1049_s26 }
  0x22   :  { %p1056_p13 = por %p1055_p12, %p1054_p11 }
  0x24   :  { %p1057_p0 = pnand %p1056_p13, %p1050_p10 }
  0x26   :  { %1060 = shalt.err (!%p1057_p0)
}
  0x27   :  { %s1175_s2 = smov 64   ;;  %s1176_s25 = smov 4  }
  0x28   :  { %104 = dma.hbm_to_vmem [thread:$0]  %s1383_s11, 2048, %s99_s22, [#allocation12], %s1175_s2, %s1175_s2, %s1176_s25  }
  0x29   :  { %s1069_s27 = scalar_lea.vmem %s34_s24, 128  ;;  %p1074_p2 = scmp.lt.s32.totalorder %s34_s24, %s34_s24 }
  0x2a   :  { %p1070_p1 = scmp.ne.s32.totalorder %s34_s24, %s1069_s27  ;;  %p1075_p3 = scmp.lt.s32.totalorder %s1069_s27, %s1069_s27 }
  0x2c   :  { %p1076_p4 = por %p1075_p3, %p1074_p2 }
  0x2e   :  { %p1077_p5 = pnand %p1076_p4, %p1070_p1 }
  0x30   :  { %1080 = shalt.err (!%p1077_p5)
}
  0x31   :  { %s1392_s30 = sld [smem:[#allocation20_spill]]  ;;  %s1177_s18 = smov [#allocation7]  }
  0x32   :  { %s54_s19 = sshll.u32 %s1177_s18, 4  ;;  %s1178_s1 = smov [#allocation10]   ;;  %s55_s19 = int_to_ptr.vmem [resolvable:$true] %s54_s19 }
  0x33   :  { %s80_s20 = sshll.u32 %s1178_s1, 4  ;;  %s1089_s21 = scalar_lea.vmem %s55_s19, 128  ;;  %s81_s20 = int_to_ptr.vmem [resolvable:$true] %s80_s20 }
  0x34   :  { %p1090_p6 = scmp.ne.s32.totalorder %s55_s19, %s1089_s21  ;;  %p1094_p7 = scmp.lt.s32.totalorder %s55_s19, %s55_s19 }
  0x35   :  { %p1095_p8 = scmp.lt.s32.totalorder %s1089_s21, %s1089_s21 }
  0x37   :  { %36 = dma.hbm_to_vmem [thread:$0]  %s1392_s30, 128, %s34_s24, [#allocation3]  }
  0x38   :  { %p1096_p9 = por %p1095_p8, %p1094_p7 }
  0x3a   :  { %p1097_p10 = pnand %p1096_p9, %p1090_p6 }
  0x3c   :  { %1100 = shalt.err (!%p1097_p10)
}
  0x3d   :  { %60 = dma.hbm_to_vmem [thread:$0]  %s1375_s3, 128, %s55_s19, [#allocation6], %s1175_s2, %s1175_s2, %s1176_s25  }
  0x3e   :  { %s1109_s23 = scalar_lea.vmem %s81_s20, 2048  ;;  %p1114_p12 = scmp.lt.s32.totalorder %s81_s20, %s81_s20 }
  0x3f   :  { %p1110_p11 = scmp.ne.s32.totalorder %s81_s20, %s1109_s23  ;;  %p1115_p13 = scmp.lt.s32.totalorder %s1109_s23, %s1109_s23 }
  0x41   :  { %p1116_p0 = por %p1115_p13, %p1114_p12 }
  0x43   :  { %p1117_p1 = pnand %p1116_p0, %p1110_p11 }
  0x45   :  { %1120 = shalt.err (!%p1117_p1)
}
  0x46   :  { %s1179_s24 = smov 128   ;;  %s1180_s26 = smov 8  }
  0x47   :  { %86 = dma.hbm_to_vmem [thread:$0]  %s1379_s7, 2048, %s81_s20, [#allocation9], %s1179_s24, %s1179_s24, %s1180_s26  }
  0x48   :  { %s1181_s27 = smov [#allocation13]  }
  0x49   :  { %s116_s29 = sshll.u32 %s1181_s27, 4  ;;  %s117_s29 = int_to_ptr.vmem [resolvable:$true] %s116_s29 }
  0x4a   :  { %s1129_s0 = scalar_lea.vmem %s117_s29, 1024  ;;  %p1134_p3 = scmp.lt.s32.totalorder %s117_s29, %s117_s29 }
  0x4b   :  { %p1130_p2 = scmp.ne.s32.totalorder %s117_s29, %s1129_s0  ;;  %p1135_p4 = scmp.lt.s32.totalorder %s1129_s0, %s1129_s0 }
  0x4d   :  { %p1136_p5 = por %p1135_p4, %p1134_p3 }
  0x4f   :  { %p1137_p6 = pnand %p1136_p5, %p1130_p2 }
  0x51   :  { %1140 = shalt.err (!%p1137_p6)
}
  0x52   :  { %122 = dma.hbm_to_vmem [thread:$0]  %s1387_s15, 1024, %s117_s29, [#allocation12], %s1175_s2, %s1175_s2, %s1176_s25  }
  0x53   :  { %1161 = dma.done.wait [#allocation3], 128  }
  0x54   :  { %1162 = vsyncadd [#allocation3], 4294967168 }
  0x55   :  { %1163 = dma.done.wait [#allocation6], 144  }
  0x56   :  { %1164 = vsyncadd [#allocation6], 4294967152 }
  0x57   :  { %1165 = dma.done.wait [#allocation9], 2064  }
  0x58   :  { %1166 = vsyncadd [#allocation9], 4294965232 }
  0x59   :  { %1167 = dma.done.wait [#allocation12], 3072  }
  0x5a   :  { %1168 = vsyncadd [#allocation12], 4294964224  ;;  %vm150_vm0 = vcmask 89088   ;;  %v147_v0 = vld [vmem:[#allocation2] sm:$0xff]  ;;  %v944_v4 = vld [vmem:[#allocation7] sm:$0x3f]  }
  0x5b   :  { %v151_v1 = vsel %vm150_vm0, %v147_v0, 0.0  ;;  %v156_v2 = vmul.f32 %v147_v0, %v147_v0  ;;  %vm200_vm1 = vcmask 1044480   ;;  %vm201_vm2 = vcmask 1045504   ;;  %s1393_s2 = sld [smem:[#allocation21_spill]]  ;;  %v819_v22 = vld [vmem:[#allocation5] ss:$0 sm:$0xff] }
  0x5c   :  { %152 = vadd.xlane.f32.xlu0 %v151_v1  ;;  %v1182_v5 = vmov 0.0   ;;  %v1183_v6 = vmov 65535   ;;  %vm1184_vm3 = vmmov 0   ;;  %v820_v26 = vld [vmem:[#allocation8] ss:$0 sm:$0xff]  ;;  %v1185_v45 = vmov 0  }
  0x5d   :  { %v157_v3 = vsel %vm150_vm0, %v156_v2, 0.0  ;;  %902 = vmatprep.subr.bf16.mxu0 %v1182_v5  ;;  %v202_v7 = vsel %vm200_vm1, 4294967295, %v1183_v6  ;;  %904 = vmatprep.mubr.msk.bf16.mxu0 %vm1184_vm3, %v1182_v5  ;;  %v945_v34 = vld [vmem:[#allocation10 + $0x74] ss:$8 sps:$4 sm:$0xff]   ;;  %v947_v35 = vld [vmem:[#allocation10 + $0x70] ss:$8 sps:$4 sm:$0xff]  }
  0x5e   :  { %v203_v8 = vsel %vm201_vm2, %v202_v7, 0  ;;  %388 = vmatprep.subr.bf16.mxu1 %v945_v34  ;;  %v948_v36 = vld [vmem:[#allocation10 + $0x64] ss:$8 sps:$4 sm:$0xff]   ;;  %v950_v37 = vld [vmem:[#allocation10 + $0x60] ss:$8 sps:$4 sm:$0xff]   ;;  %420 = vmatprep.mubr.bf16.mxu1 %v1185_v45  ;;  %v980_v34 = vld [vmem:[#allocation11 + $0x10] sm:$0xff]  }
  0x5f   :  { %v205_v9 = vand.u32 %v944_v4, %v203_v8  ;;  %389 = vmatpush1.bf16.msra.mxu1 %v947_v35  ;;  %v951_v38 = vld [vmem:[#allocation10 + $0x54] ss:$8 sps:$4 sm:$0xff]   ;;  %v953_v39 = vld [vmem:[#allocation10 + $0x50] ss:$8 sps:$4 sm:$0xff]   ;;  %v954_v40 = vld [vmem:[#allocation10 + $0x44] ss:$8 sps:$4 sm:$0xff]  }
  0x60   :  { %158 = vadd.xlane.f32.xlu0 %v157_v3  ;;  %390 = vmatprep.subr.bf16.mxu1 %v948_v36  ;;  %v956_v41 = vld [vmem:[#allocation10 + $0x40] ss:$8 sps:$4 sm:$0xff]   ;;  %v957_v42 = vld [vmem:[#allocation10 + $0x34] ss:$8 sps:$4 sm:$0xff]   ;;  %v959_v43 = vld [vmem:[#allocation10 + $0x30] ss:$8 sps:$4 sm:$0xff]   ;;  %v298_v3 = vlaneseq }
  0x61   :  { %903 = vmatpush3.bf16.msra.mxu0 %v205_v9  ;;  %v818_v20 = vld [vmem:[%s1393_s2] ss:$0 sm:$0xff]  ;;  %v962_v46 = vld [vmem:[#allocation10 + $0x20] ss:$8 sps:$4 sm:$0xff]   ;;  %v963_v47 = vld [vmem:[#allocation10 + $0x14] ss:$8 sps:$4 sm:$0xff]  }
  0x62   :  { %v960_v44 = vld [vmem:[#allocation10 + $0x24] ss:$8 sps:$4 sm:$0xff]   ;;  %v965_v48 = vld [vmem:[#allocation10 + $0x10] ss:$8 sps:$4 sm:$0xff]   ;;  %v968_v50 = vld [vmem:[#allocation10] ss:$8 sps:$4 sm:$0xff]  }
  0x63   :  { %391 = vmatpush1.bf16.msra.mxu1 %v950_v37  ;;  %v966_v49 = vld [vmem:[#allocation10 + $0x4] ss:$8 sps:$4 sm:$0xff]   ;;  %v299_v4 = vshrl.u32 %v298_v3, 7  ;;  %s1186_s4 = smov [#allocation14]  }
  0x64   :  { %392 = vmatprep.subr.bf16.mxu1 %v951_v38  ;;  %v823_v61 = vld [vmem:[%s1377_s5] ss:$0 sm:$0xff]  ;;  %v983_v37 = vld [vmem:[#allocation11 + $0x40] sm:$0xff]   ;;  %s806_s27 = sshll.u32 %s1186_s4, 4  ;;  %s807_s27 = int_to_ptr.vmem [resolvable:$true] %s806_s27 }
  0x65   :  { %v824_v63 = vld [vmem:[%s1378_s6] ss:$0 sm:$0xff]  ;;  %v1325_v6 = vsub.s32 0, %v299_v4  ;;  %v1330_v8 = vsub.s32 1, %v299_v4  ;;  %v984_v38 = vld [vmem:[#allocation11] sm:$0xff]   ;;  %p1146_p8 = scmp.lt.s32.totalorder %s807_s27, %s807_s27 }
  0x66   :  { %v296_v7 = vld [vmem:[%s1380_s8] sm:$0x3] }
  0x67   :  { %393 = vmatpush1.bf16.msra.mxu1 %v953_v39  ;;  %v301_v9 = vrot.slane %v296_v7, %v1325_v6  ;;  %v981_v35 = vld [vmem:[#allocation11 + $0x48] sm:$0xff]  }
  0x68   :  { %394 = vmatprep.subr.bf16.mxu1 %v954_v40  ;;  %v982_v36 = vld [vmem:[#allocation11 + $0x8] sm:$0xff]  }
  0x6b   :  { %395 = vmatpush1.bf16.msra.mxu1 %v956_v41 }
  0x6c   :  { %396 = vmatprep.subr.bf16.mxu1 %v957_v42 }
  0x6f   :  { %397 = vmatpush1.bf16.msra.mxu1 %v959_v43 }
  0x70   :  { %398 = vmatprep.subr.bf16.mxu1 %v960_v44 }
  0x73   :  { %399 = vmatpush1.bf16.msra.mxu1 %v962_v46 }
  0x74   :  { %400 = vmatprep.subr.bf16.mxu1 %v963_v47  ;;  %v431_v47 = vld [vmem:[%s1381_s9] sm:$0x3] }
  0x77   :  { %401 = vmatpush1.bf16.msra.mxu1 %v965_v48  ;;  %v432_v48 = vld [vmem:[%s1382_s10] sm:$0x3] }
  0x78   :  { %402 = vmatprep.subr.bf16.mxu1 %v966_v49 }
  0x7b   :  { %403 = vmatpush1.bf16.msra.mxu1 %v968_v50 }
  0x7c   :  { %908 = vmatprep.subr.bf16.mxu1 %v1182_v5 }
  0xe5   :  { %v153_v10 = vpop.xlane.xlu0 %152 }
  0xe6   :  { %v155_v11 = vmul.f32 0.09090909, %v153_v10  ;;  %v305_v10 = vrot.slane %v296_v7, %v1330_v8 }
  0xe8   :  { %v161_v13 = vmul.f32 %v155_v11, %v155_v11  ;;  %v164_v18 = vsub.f32 %v147_v0, %v155_v11 }
  0xe9   :  { %v159_v12 = vpop.xlane.xlu0 %158 }
  0xea   :  { %v160_v14 = vmul.f32 0.09090909, %v159_v12 }
  0xec   :  { %v162_v15 = vsub.f32 %v160_v14, %v161_v13 }
  0xee   :  { %v163_v16 = vmax.f32 %v162_v15, 0.0 }
  0xf0   :  { %v165_v17 = vadd.f32 1e-05, %v163_v16 }
  0xf2   :  { %993 = vrsqrt.f32 %v165_v17 }
  0xff   :  { %v994_v19 = vpop.eup %993 }
 0x100   :  { %v167_v21 = vmul.f32 %v994_v19, %v164_v18 }
 0x102   :  { %v174_v23 = vmul.f32 %v818_v20, %v167_v21 }
 0x104   :  { %v181_v24 = vadd.f32 %v819_v22, %v174_v23  ;;  %v969_v23 = vld [vmem:[#allocation11 + $0x78] sm:$0xff]  }
 0x105   :  { %871 = vmatprep.subr.bf16.mxu0 %v969_v23 }
 0x106   :  { %v182_v25 = vpack.c.bf16 %v181_v24, %v181_v24  ;;  %v970_v24 = vld [vmem:[#allocation11 + $0x38] sm:$0xff]  }
 0x108   :  { %905 = vmatmul.mubr.msk.bf16.vlgmr.msra.gmra.mxu0 %vm150_vm0, %v182_v25  ;;  %v971_v25 = vld [vmem:[#allocation11 + $0x70] sm:$0xff]  }
 0x109   :  { %872 = vmatpush3.bf16.msra.mxu0 %v970_v24 }
 0x10a   :  { %873 = vmatprep.subr.bf16.mxu0 %v971_v25 }
 0x1c8   :  { %v241_v27 = vpop.f32.mrf.mxu0 }
 0x1c9   :  { %v242_v28 = vadd.f32 %v820_v26, %v241_v27  ;;  %v972_v26 = vld [vmem:[#allocation11 + $0x30] sm:$0xff]   ;;  %v973_v27 = vld [vmem:[#allocation11 + $0x68] sm:$0xff]  }
 0x1ca   :  { %v906_v29 = vpop.f32.mrf.mxu0  ;;  %874 = vmatpush3.bf16.msra.mxu0 %v972_v26 }
 0x1cb   :  { %v247_v30 = vmax.f32 %v242_v28, 0.0  ;;  %v974_v28 = vld [vmem:[#allocation11 + $0x28] sm:$0xff]   ;;  %875 = vmatprep.subr.bf16.mxu0 %v973_v27  ;;  %v975_v29 = vld [vmem:[#allocation11 + $0x60] sm:$0xff]  }
 0x1cc   :  { %v244_v31 = vpop.f32.mrf.mxu0 }
 0x1cd   :  { %250 = vadd.xlane.f32.xlu1 %v247_v30  ;;  %v254_v33 = vmul.f32 %v247_v30, %v247_v30  ;;  %v977_v31 = vld [vmem:[#allocation11 + $0x58] sm:$0xff]  }
 0x1ce   :  { %v907_v32 = vpop.f32.mrf.mxu0  ;;  %876 = vmatpush3.bf16.msra.mxu0 %v974_v28  ;;  %v858_v28 = vld [vmem:[%s1385_s13] ss:$0 sm:$0xff]  ;;  %s1141_s13 = scalar_lea.vmem %s807_s27, 128 }
 0x1cf   :  { %877 = vmatprep.subr.bf16.mxu0 %v975_v29  ;;  %v978_v32 = vld [vmem:[#allocation11 + $0x18] sm:$0xff]   ;;  %p1142_p7 = scmp.ne.s32.totalorder %s807_s27, %s1141_s13  ;;  %p1147_p9 = scmp.lt.s32.totalorder %s1141_s13, %s1141_s13 }
 0x1d1   :  { %255 = vadd.xlane.f32.xlu1 %v254_v33  ;;  %v979_v33 = vld [vmem:[#allocation11 + $0x50] sm:$0xff]   ;;  %p1148_p10 = por %p1147_p9, %p1146_p8 }
 0x1d3   :  { %p1149_p11 = pnand %p1148_p10, %p1142_p7 }
 0x256   :  { %v251_v51 = vpop.xlane.xlu1 %250 }
 0x257   :  { %v253_v52 = vmul.f32 0.0078125, %v251_v51  ;;  %v457_v51 = vrot.slane %v431_v47, %v1325_v6 }
 0x259   :  { %v258_v54 = vmul.f32 %v253_v52, %v253_v52  ;;  %v261_v59 = vsub.f32 %v247_v30, %v253_v52  ;;  %v976_v30 = vld [vmem:[#allocation11 + $0x20] sm:$0xff]   ;;  %v461_v52 = vrot.slane %v431_v47, %v1330_v8 }
 0x25a   :  { %v256_v53 = vpop.xlane.xlu1 %255  ;;  %878 = vmatpush3.bf16.msra.mxu0 %v976_v30 }
 0x25b   :  { %v257_v55 = vmul.f32 0.0078125, %v256_v53  ;;  %879 = vmatprep.subr.bf16.mxu0 %v977_v31 }
 0x25d   :  { %v259_v56 = vsub.f32 %v257_v55, %v258_v54  ;;  %v470_v55 = vrot.slane %v432_v48, %v1325_v6 }
 0x25e   :  { %880 = vmatpush3.bf16.msra.mxu0 %v978_v32 }
 0x25f   :  { %v260_v57 = vmax.f32 %v259_v56, 0.0  ;;  %881 = vmatprep.subr.bf16.mxu0 %v979_v33  ;;  %v474_v56 = vrot.slane %v432_v48, %v1330_v8  ;;  %v860_v33 = vld [vmem:[%s1388_s16] ss:$0 sm:$0xff] }
 0x261   :  { %v262_v58 = vadd.f32 1e-05, %v260_v57 }
 0x262   :  { %882 = vmatpush3.bf16.msra.mxu0 %v980_v34 }
 0x263   :  { %995 = vrsqrt.f32 %v262_v58  ;;  %883 = vmatprep.subr.bf16.mxu0 %v981_v35 }
 0x266   :  { %884 = vmatpush3.bf16.msra.mxu0 %v982_v36 }
 0x267   :  { %885 = vmatprep.subr.bf16.mxu0 %v983_v37 }
 0x26a   :  { %886 = vmatpush3.bf16.msra.mxu0 %v984_v38 }
 0x270   :  { %v996_v60 = vpop.eup %995 }
 0x271   :  { %v264_v62 = vmul.f32 %v996_v60, %v261_v59 }
 0x273   :  { %v271_v0 = vmul.f32 %v823_v61, %v264_v62 }
 0x275   :  { %v278_v1 = vadd.f32 %v824_v63, %v271_v0 }
 0x277   :  { %v279_v2 = vpack.c.bf16 %v278_v1, %v278_v1  ;;  %v841_v1 = vld [vmem:[%s1384_s12] ss:$0 sm:$0xff] }
 0x279   :  { %421 = vmatmul.mubr.bf16.vlgmr.msra.gmra.mxu1 %v279_v2 }
 0x27a   :  { %924 = vmatprep.mubr.msk.bf16.mxu1 %vm1184_vm3, %v1182_v5 }
 0x339   :  { %v422_v11 = vpop.f32.mrf.mxu1 }
 0x33a   :  { %v423_v12 = vadd.f32 %v422_v11, %v301_v9  ;;  %v986_v11 = vld [vmem:[#allocation13 + $0x30] sm:$0xff]  }
 0x33b   :  { %v424_v13 = vpop.f32.mrf.mxu1 }
 0x33c   :  { %v1334_v14 = vmax.f32 %v423_v12, 0.0  ;;  %v425_v15 = vadd.f32 %v424_v13, %v305_v10  ;;  %v985_v10 = vld [vmem:[#allocation13 + $0x38] sm:$0xff]   ;;  %v987_v12 = vld [vmem:[#allocation13 + $0x28] sm:$0xff]   ;;  %v988_v13 = vld [vmem:[#allocation13 + $0x20] sm:$0xff]  }
 0x33d   :  { %v426_v16 = vpop.f32.mrf.mxu1  ;;  %909 = vmatpush3.bf16.msra.mxu1 %v985_v10 }
 0x33e   :  { %v430_v17 = vmax.f32 %v425_v15, 0.0  ;;  %v438_v20 = vmul.f32 %v1334_v14, %v1334_v14  ;;  %910 = vmatprep.subr.bf16.mxu1 %v1182_v5  ;;  %v990_v15 = vld [vmem:[#allocation13 + $0x10] sm:$0xff]   ;;  %v991_v16 = vld [vmem:[#allocation13 + $0x8] sm:$0xff]  }
 0x33f   :  { %v427_v18 = vpop.f32.mrf.mxu1 }
 0x340   :  { %v433_v19 = vadd.f32 %v430_v17, %v1334_v14  ;;  %v439_v21 = vmul.f32 %v430_v17, %v430_v17 }
 0x341   :  { %911 = vmatpush3.bf16.msra.mxu1 %v986_v11 }
 0x342   :  { %434 = vadd.xlane.f32.xlu0 %v433_v19  ;;  %v440_v22 = vadd.f32 %v439_v21, %v438_v20  ;;  %912 = vmatprep.subr.bf16.mxu1 %v1182_v5 }
 0x344   :  { %441 = vadd.xlane.f32.xlu1 %v440_v22 }
 0x345   :  { %913 = vmatpush3.bf16.msra.mxu1 %v987_v12 }
 0x346   :  { %914 = vmatprep.subr.bf16.mxu1 %v1182_v5 }
 0x349   :  { %915 = vmatpush3.bf16.msra.mxu1 %v988_v13 }
 0x34a   :  { %916 = vmatprep.subr.bf16.mxu1 %v1182_v5 }
 0x3cb   :  { %v435_v39 = vpop.xlane.xlu0 %434 }
 0x3cc   :  { %v437_v40 = vmul.f32 0.00390625, %v435_v39 }
 0x3cd   :  { %v442_v41 = vpop.xlane.xlu1 %441 }
 0x3ce   :  { %v443_v42 = vmul.f32 0.00390625, %v442_v41  ;;  %v444_v43 = vmul.f32 %v437_v40, %v437_v40  ;;  %v447_v49 = vsub.f32 %v1334_v14, %v437_v40  ;;  %v448_v50 = vsub.f32 %v430_v17, %v437_v40  ;;  %v989_v14 = vld [vmem:[#allocation13 + $0x18] sm:$0xff]   ;;  %v992_v17 = vld [vmem:[#allocation13] sm:$0xff]  }
 0x3cf   :  { %917 = vmatpush3.bf16.msra.mxu1 %v989_v14 }
 0x3d0   :  { %v445_v44 = vsub.f32 %v443_v42, %v444_v43  ;;  %918 = vmatprep.subr.bf16.mxu1 %v1182_v5 }
 0x3d2   :  { %v446_v45 = vmax.f32 %v445_v44, 0.0 }
 0x3d3   :  { %919 = vmatpush3.bf16.msra.mxu1 %v990_v15 }
 0x3d4   :  { %v449_v46 = vadd.f32 1e-05, %v446_v45  ;;  %920 = vmatprep.subr.bf16.mxu1 %v1182_v5 }
 0x3d6   :  { %997 = vrsqrt.f32 %v449_v46 }
 0x3d7   :  { %921 = vmatpush3.bf16.msra.mxu1 %v991_v16 }
 0x3d8   :  { %922 = vmatprep.subr.bf16.mxu1 %v1182_v5  ;;  %v859_v5 = vld [vmem:[%s1386_s14] ss:$0 sm:$0xff] }
 0x3db   :  { %923 = vmatpush3.bf16.msra.mxu1 %v992_v17 }
 0x3e3   :  { %v998_v53 = vpop.eup %997 }
 0x3e4   :  { %v452_v54 = vmul.f32 %v998_v53, %v448_v50  ;;  %v451_v57 = vmul.f32 %v998_v53, %v447_v49 }
 0x3e6   :  { %v465_v58 = vmul.f32 %v461_v52, %v452_v54  ;;  %v464_v59 = vmul.f32 %v457_v51, %v451_v57 }
 0x3e8   :  { %v478_v60 = vadd.f32 %v474_v56, %v465_v58  ;;  %v477_v61 = vadd.f32 %v470_v55, %v464_v59 }
 0x3ea   :  { %v480_v62 = vpack.c.bf16 %v478_v60, %v478_v60  ;;  %v479_v63 = vpack.c.bf16 %v477_v61, %v477_v61 }
 0x3ec   :  { %648 = vmatprep.mubr.bf16.mxu0 %v480_v62 }
 0x3ed   :  { %649 = vmatmul.mubr.bf16.vlgmr.msra.gmra.mxu0 %v479_v63 }
 0x4ad   :  { %v887_v0 = vpop.f32.mrf.mxu0 }
 0x4af   :  { %v888_v2 = vpop.f32.mrf.mxu0 }
 0x4b0   :  { %v889_v3 = vadd.f32 %v888_v2, %v887_v0 }
 0x4b1   :  { %v890_v4 = vpop.f32.mrf.mxu0 }
 0x4b2   :  { %v651_v6 = vadd.f32 %v889_v3, %v841_v1 }
 0x4b3   :  { %v891_v7 = vpop.f32.mrf.mxu0 }
 0x4b4   :  { %v656_v8 = vmax.f32 %v651_v6, 0.0 }
 0x4b6   :  { %659 = vadd.xlane.f32.xlu0 %v656_v8  ;;  %v662_v9 = vmul.f32 %v656_v8, %v656_v8 }
 0x4b8   :  { %663 = vadd.xlane.f32.xlu1 %v662_v9 }
 0x53f   :  { %v660_v18 = vpop.xlane.xlu0 %659 }
 0x540   :  { %v661_v19 = vmul.f32 0.0078125, %v660_v18 }
 0x541   :  { %v664_v20 = vpop.xlane.xlu1 %663 }
 0x542   :  { %v666_v21 = vmul.f32 %v661_v19, %v661_v19  ;;  %v665_v22 = vmul.f32 0.0078125, %v664_v20  ;;  %v669_v26 = vsub.f32 %v656_v8, %v661_v19 }
 0x544   :  { %v667_v23 = vsub.f32 %v665_v22, %v666_v21 }
 0x546   :  { %v668_v24 = vmax.f32 %v667_v23, 0.0 }
 0x548   :  { %v670_v25 = vadd.f32 1e-05, %v668_v24 }
 0x54a   :  { %999 = vrsqrt.f32 %v670_v25 }
 0x557   :  { %v1000_v27 = vpop.eup %999 }
 0x558   :  { %v672_v29 = vmul.f32 %v1000_v27, %v669_v26 }
 0x55a   :  { %v679_v30 = vmul.f32 %v858_v28, %v672_v29 }
 0x55c   :  { %v686_v31 = vadd.f32 %v859_v5, %v679_v30 }
 0x55e   :  { %v687_v32 = vpack.c.bf16 %v686_v31, %v686_v31 }
 0x560   :  { %925 = vmatmul.mubr.bf16.vlgmr.msra.gmra.mxu1 %v687_v32 }
 0x620   :  { %v793_v34 = vpop.f32.mrf.mxu1 }
 0x621   :  { %v794_v35 = vadd.f32 %v860_v33, %v793_v34 }
 0x622   :  { %v926_v36 = vpop.f32.mrf.mxu1 }
 0x623   :  { %799 = vst [vmem:[#allocation14] sm:$0xff] %v794_v35 }
 0x624   :  { %v796_v37 = vpop.f32.mrf.mxu1 }
 0x625   :  { %1152 = shalt.err (!%p1149_p11)
}
 0x626   :  { %809 = dma.vmem_to_hbm [thread:$0]  %s807_s27, 128, %s1389_s17, [#allocation4]   ;;  %v927_v38 = vpop.f32.mrf.mxu1 }
 0x627   :  { %1169 = dma.done.wait [#allocation4], 128  }
 0x628   :  { %1170 = vsyncadd [#allocation4], 4294967168 }
 0x629   :  { %813 = vsyncpa [#allocation3], 1 }
 0x62a   :  { %814 = vsyncpa [#allocation6], 1 }
 0x62b   :  { %815 = vsyncpa [#allocation9], 1 }
 0x62c   :  { %816 = vsyncpa [#allocation12], 1 }
 0x62d   :  { %817 = vsyncpa [#allocation4], 1 }

</bundles_post_ra>
